<compile_context>
chip_gen: v7x
topology: tpu7x:2x2x1
jax: 0.10.0
libtpu: 0.0.40
codegen_flags: <defaults>
</compile_context>

<pallas_src>
import jax
import jax.numpy as jnp
from jax.experimental import pallas as pl
from jax.experimental.pallas import tpu as pltpu

OBS_SIZE = 32
N_ACTIONS = 6
HIDDEN = 64
NUM_RESIDUALS = 4
N_LAYERS = 2 + 2 * NUM_RESIDUALS       # 10 Linear layers total
PAD = 128                              # lane-dense row width (2 samples/row)
HALF = PAD // 2                        # 64-lane half-row per sample
MAX_TILE_B = 256                       # max packed rows per grid step


# ----------------------------- kernel ---------------------------------------

def actor_kernel(x_ref, w_ref, b_ref, o_ref):
    # x_ref: [TILE_B, 2*OBS] bf16  -- sample 2j in lanes 0:32, 2j+1 in 32:64
    # w_ref: [N_LAYERS, PAD, PAD] bf16 -- block-diagonal packed weights
    # b_ref: [N_LAYERS, 1, PAD] f32    -- per-layer bias, duplicated per half
    # o_ref: [TILE_B, PAD] bf16        -- actions: lanes 0:6 / 64:70 per row

    def pre(h16, idx):
        # bf16 matmul, f32 MXU accumulate, f32 bias add
        return jnp.dot(h16, w_ref[idx], preferred_element_type=jnp.float32) + b_ref[idx]

    # input layer: K = 2*OBS lanes (two packed samples); f32 tanh (residual carry)
    h = jnp.tanh(
        jnp.dot(x_ref[...], w_ref[0, :2 * OBS_SIZE, :],
                preferred_element_type=jnp.float32) + b_ref[0])

    # 4 residual blocks: h = h + tanh(W2 tanh(W1 h + b1) + b2)
    # inner tanhs in bf16 (v6e/v7x EUP bf16); carry h stays f32
    for r in range(NUM_RESIDUALS):
        t = jnp.tanh(pre(h.astype(jnp.bfloat16), 1 + 2 * r).astype(jnp.bfloat16))
        t = jnp.tanh(pre(t, 2 + 2 * r).astype(jnp.bfloat16))
        h = h + t.astype(jnp.float32)

    # output layer: f32 tanh, bf16 lane-dense store
    o_ref[...] = jnp.tanh(pre(h.astype(jnp.bfloat16), N_LAYERS - 1)).astype(jnp.bfloat16)


def _tiling(rows):
    """Pick (tile_b, n_tiles): tiles <= MAX_TILE_B rows, even tile count when
    there is enough work (v7x has 2 TensorCores), everything a multiple of 8."""
    if rows < 16:
        tile_b = max(8, -(-rows // 8) * 8)
        return tile_b, 1
    n_tiles = max(2, -(-rows // MAX_TILE_B))
    if n_tiles % 2:
        n_tiles += 1
    tile_b = max(8, (-(-rows // n_tiles) + 7) // 8 * 8)
    n_tiles = -(-rows // tile_b)
    return tile_b, n_tiles


def _actor_call(xp, w_slab, b_slab, tile_b, n_tiles):
    bp = xp.shape[0]
    cost = pl.CostEstimate(
        flops=2 * bp * (2 * OBS_SIZE * PAD + (N_LAYERS - 1) * PAD * PAD),
        transcendentals=bp * PAD * N_LAYERS,
        bytes_accessed=int(xp.size * 2 + w_slab.size * 2
                           + b_slab.size * 4 + bp * PAD * 2),
    )
    return pl.pallas_call(
        actor_kernel,
        out_shape=jax.ShapeDtypeStruct((bp, PAD), jnp.bfloat16),
        grid=(n_tiles,),
        in_specs=[
            pl.BlockSpec((tile_b, 2 * OBS_SIZE), lambda i: (i, 0)),       # x tile
            pl.BlockSpec((N_LAYERS, PAD, PAD), lambda i: (0, 0, 0)),      # weights (resident)
            pl.BlockSpec((N_LAYERS, 1, PAD), lambda i: (0, 0, 0)),        # biases (resident)
        ],
        out_specs=pl.BlockSpec((tile_b, PAD), lambda i: (i, 0)),
        compiler_params=pltpu.CompilerParams(
            dimension_semantics=("parallel",)),
        cost_estimate=cost,
    )(xp, w_slab, b_slab)


@jax.jit
def actor_forward(x, w_slab, b_slab):
    """x: [B, OBS_SIZE] f32 -> [B, N_ACTIONS] f32."""
    b = x.shape[0]
    rows = (b + 1) // 2                       # 2 samples per packed row
    tile_b, n_tiles = _tiling(rows)
    bp = tile_b * n_tiles
    # pack: [B, OBS] -> [bp, 2*OBS] bf16 (contiguous reshape, no lane padding)
    xp = jnp.zeros((2 * bp, OBS_SIZE), jnp.bfloat16).at[:b].set(x.astype(jnp.bfloat16))
    xp = xp.reshape(bp, 2 * OBS_SIZE)
    out = _actor_call(xp, w_slab, b_slab, tile_b, n_tiles)      # [bp, PAD] bf16
    # unpack: per row, sample 2j actions in lanes 0:6, sample 2j+1 in lanes 64:70
    acts = out.reshape(bp, 2, HALF)[:, :, :N_ACTIONS].reshape(2 * bp, N_ACTIONS)
    return acts[:b].astype(jnp.float32)


# ----------------------------- params ---------------------------------------

def make_params(key):
    """List of 10 (W [in,out], b [out]) f32 pairs, PyTorch-like uniform init."""
    dims = ([(OBS_SIZE, HIDDEN)]
            + [(HIDDEN, HIDDEN)] * (2 * NUM_RESIDUALS)
            + [(HIDDEN, N_ACTIONS)])
    keys = jax.random.split(key, 2 * len(dims))
    params = []
    for i, (fi, fo) in enumerate(dims):
        bound = 1.0 / (fi ** 0.5)
        w = jax.random.uniform(keys[2 * i], (fi, fo), jnp.float32, -bound, bound)
        b = jax.random.uniform(keys[2 * i + 1], (fo,), jnp.float32, -bound, bound)
        params.append((w, b))
    return params


def pack_params(params):
    """Block-diagonal 2-samples-per-row packing into one bf16 weight slab
    [10,128,128] and one f32 bias slab [10,1,128]. Padding is exact zero."""
    assert HIDDEN <= HALF and N_ACTIONS <= HALF and 2 * OBS_SIZE <= PAD
    w_slab = jnp.zeros((N_LAYERS, PAD, PAD), jnp.float32)
    b_slab = jnp.zeros((N_LAYERS, 1, PAD), jnp.float32)
    for i, (w, b) in enumerate(params):
        fi, fo = w.shape
        if i == 0:
            # input layer: K lanes are [obs_A | obs_B]; A -> out 0:HALF, B -> HALF:
            w_slab = w_slab.at[0, :fi, :fo].set(w)
            w_slab = w_slab.at[0, fi:2 * fi, HALF:HALF + fo].set(w)
        else:
            w_slab = w_slab.at[i, :fi, :fo].set(w)
            w_slab = w_slab.at[i, HALF:HALF + fi, HALF:HALF + fo].set(w)
        b_slab = b_slab.at[i, 0, :fo].set(b)
        b_slab = b_slab.at[i, 0, HALF:HALF + fo].set(b)
    return w_slab.astype(jnp.bfloat16), b_slab


# --------------------------- references --------------------------------------

def actor_ref_f32(x, params):
    """Full f32 semantics of the PyTorch module."""
    h = jnp.tanh(x @ params[0][0] + params[0][1])
    for r in range(NUM_RESIDUALS):
        w1, b1 = params[1 + 2 * r]
        w2, b2 = params[2 + 2 * r]
        h = h + jnp.tanh(jnp.tanh(h @ w1 + b1) @ w2 + b2)
    w_o, b_o = params[-1]
    return jnp.tanh(h @ w_o + b_o)


def actor_ref_mixed(x, params):
    """Same mixed-precision recipe as the kernel (bf16 matmuls / f32 acc,
    bf16 inner tanh, f32 carry, bf16 output store)."""
    bf = jnp.bfloat16

    def dot(a, w):
        return jnp.dot(a.astype(bf), w.astype(bf), preferred_element_type=jnp.float32)

    h = jnp.tanh(dot(x, params[0][0]) + params[0][1])
    for r in range(NUM_RESIDUALS):
        w1, b1 = params[1 + 2 * r]
        w2, b2 = params[2 + 2 * r]
        t = jnp.tanh((dot(h, w1) + b1).astype(bf))
        t = jnp.tanh((dot(t, w2) + b2).astype(bf))
        h = h + t.astype(jnp.float32)
    w_o, b_o = params[-1]
    return jnp.tanh(dot(h, w_o) + b_o).astype(bf).astype(jnp.float32)


# ------------------------------ main -----------------------------------------

if __name__ == "__main__":
    key = jax.random.PRNGKey(0)
    kx, kp = jax.random.split(key)
    BATCH = 64
    x = jax.random.normal(kx, (BATCH, OBS_SIZE), jnp.float32)

    params = make_params(kp)
    w_slab, b_slab = pack_params(params)

    out = jax.block_until_ready(actor_forward(x, w_slab, b_slab))
    assert out.shape == (BATCH, N_ACTIONS)

    ref_m = actor_ref_mixed(x, params)    # same numerics recipe as kernel
    ref32 = actor_ref_f32(x, params)      # exact f32 semantics of the module
    err_m = float(jnp.max(jnp.abs(out - ref_m)))
    err32 = float(jnp.max(jnp.abs(out - ref32)))
    assert err_m < 7.5e-2, ("mixed-precision reference mismatch", err_m)
    assert err32 < 1.5e-1, ("f32 reference mismatch (bf16 numerics)", err32)
    print("KERNEL_OK")
</pallas_src>

<mosaic_0001>
module attributes {stable_mosaic.version = 11 : i64} {
  func.func @actor_kernel(%arg0: i32, %arg1: memref<16x64xbf16, #tpu.memory_space<vmem>>, %arg2: memref<10x128x128xbf16, #tpu.memory_space<vmem>>, %arg3: memref<10x1x128xf32, #tpu.memory_space<vmem>>, %arg4: memref<16x128xbf16, #tpu.memory_space<vmem>>) attributes {dimension_semantics = [#tpu.dimension_semantics<parallel>], iteration_bounds = array<i64: 2>, scalar_prefetch = 0 : i64, scratch_operands = 0 : i64, tpu.core_type = #tpu.core_type<tc>, window_params = [{transform_indices = @transform_0, window_bounds = array<i64: 16, 64>}, {pipeline_mode = #tpu.pipeline_mode<synchronous>, transform_indices = @transform_1, window_bounds = array<i64: 10, 128, 128>}, {pipeline_mode = #tpu.pipeline_mode<synchronous>, transform_indices = @transform_2, window_bounds = array<i64: 10, 1, 128>}, {transform_indices = @transform_3, window_bounds = array<i64: 16, 128>}]} {
    %c0 = arith.constant 0 : index
    %c0_0 = arith.constant 0 : index
    %0 = vector.load %arg1[%c0, %c0_0] : memref<16x64xbf16, #tpu.memory_space<vmem>>, vector<16x64xbf16>
    %c0_1 = arith.constant 0 : index
    %c0_2 = arith.constant 0 : index
    %c0_3 = arith.constant 0 : index
    %1 = vector.load %arg2[%c0_1, %c0_2, %c0_3] : memref<10x128x128xbf16, #tpu.memory_space<vmem>>, vector<1x64x128xbf16>
    %2 = vector.shape_cast %1 : vector<1x64x128xbf16> to vector<64x128xbf16>
    %cst = arith.constant dense<0.000000e+00> : vector<16x128xf32>
    %3 = tpu.matmul %0, %2, %cst {dimension_numbers = #tpu.dot_dimension_numbers<[1], [0], [0], [1], [0, 0, 1, 1], [], []>} : vector<16x64xbf16>, vector<64x128xbf16>, vector<16x128xf32> -> vector<16x128xf32>
    %c0_4 = arith.constant 0 : index
    %c0_5 = arith.constant 0 : index
    %c0_6 = arith.constant 0 : index
    %4 = vector.load %arg3[%c0_4, %c0_5, %c0_6] : memref<10x1x128xf32, #tpu.memory_space<vmem>>, vector<1x1x128xf32>
    %5 = vector.shape_cast %4 : vector<1x1x128xf32> to vector<1x128xf32>
    %6 = vector.broadcast %5 : vector<1x128xf32> to vector<16x128xf32>
    %7 = arith.addf %3, %6 : vector<16x128xf32>
    %8 = math.tanh %7 : vector<16x128xf32>
    %9 = arith.truncf %8 : vector<16x128xf32> to vector<16x128xbf16>
    %c1 = arith.constant 1 : index
    %c0_7 = arith.constant 0 : index
    %c0_8 = arith.constant 0 : index
    %10 = vector.load %arg2[%c1, %c0_7, %c0_8] : memref<10x128x128xbf16, #tpu.memory_space<vmem>>, vector<1x128x128xbf16>
    %11 = vector.shape_cast %10 : vector<1x128x128xbf16> to vector<128x128xbf16>
    %cst_9 = arith.constant dense<0.000000e+00> : vector<16x128xf32>
    %12 = tpu.matmul %9, %11, %cst_9 {dimension_numbers = #tpu.dot_dimension_numbers<[1], [0], [0], [1], [0, 0, 1, 1], [], []>} : vector<16x128xbf16>, vector<128x128xbf16>, vector<16x128xf32> -> vector<16x128xf32>
    %c1_10 = arith.constant 1 : index
    %c0_11 = arith.constant 0 : index
    %c0_12 = arith.constant 0 : index
    %13 = vector.load %arg3[%c1_10, %c0_11, %c0_12] : memref<10x1x128xf32, #tpu.memory_space<vmem>>, vector<1x1x128xf32>
    %14 = vector.shape_cast %13 : vector<1x1x128xf32> to vector<1x128xf32>
    %15 = vector.broadcast %14 : vector<1x128xf32> to vector<16x128xf32>
    %16 = arith.addf %12, %15 : vector<16x128xf32>
    %17 = arith.truncf %16 : vector<16x128xf32> to vector<16x128xbf16>
    %18 = math.tanh %17 : vector<16x128xbf16>
    %c2 = arith.constant 2 : index
    %c0_13 = arith.constant 0 : index
    %c0_14 = arith.constant 0 : index
    %19 = vector.load %arg2[%c2, %c0_13, %c0_14] : memref<10x128x128xbf16, #tpu.memory_space<vmem>>, vector<1x128x128xbf16>
    %20 = vector.shape_cast %19 : vector<1x128x128xbf16> to vector<128x128xbf16>
    %cst_15 = arith.constant dense<0.000000e+00> : vector<16x128xf32>
    %21 = tpu.matmul %18, %20, %cst_15 {dimension_numbers = #tpu.dot_dimension_numbers<[1], [0], [0], [1], [0, 0, 1, 1], [], []>} : vector<16x128xbf16>, vector<128x128xbf16>, vector<16x128xf32> -> vector<16x128xf32>
    %c2_16 = arith.constant 2 : index
    %c0_17 = arith.constant 0 : index
    %c0_18 = arith.constant 0 : index
    %22 = vector.load %arg3[%c2_16, %c0_17, %c0_18] : memref<10x1x128xf32, #tpu.memory_space<vmem>>, vector<1x1x128xf32>
    %23 = vector.shape_cast %22 : vector<1x1x128xf32> to vector<1x128xf32>
    %24 = vector.broadcast %23 : vector<1x128xf32> to vector<16x128xf32>
    %25 = arith.addf %21, %24 : vector<16x128xf32>
    %26 = arith.truncf %25 : vector<16x128xf32> to vector<16x128xbf16>
    %27 = math.tanh %26 : vector<16x128xbf16>
    %28 = arith.extf %27 : vector<16x128xbf16> to vector<16x128xf32>
    %29 = arith.addf %8, %28 : vector<16x128xf32>
    %30 = arith.truncf %29 : vector<16x128xf32> to vector<16x128xbf16>
    %c3 = arith.constant 3 : index
    %c0_19 = arith.constant 0 : index
    %c0_20 = arith.constant 0 : index
    %31 = vector.load %arg2[%c3, %c0_19, %c0_20] : memref<10x128x128xbf16, #tpu.memory_space<vmem>>, vector<1x128x128xbf16>
    %32 = vector.shape_cast %31 : vector<1x128x128xbf16> to vector<128x128xbf16>
    %cst_21 = arith.constant dense<0.000000e+00> : vector<16x128xf32>
    %33 = tpu.matmul %30, %32, %cst_21 {dimension_numbers = #tpu.dot_dimension_numbers<[1], [0], [0], [1], [0, 0, 1, 1], [], []>} : vector<16x128xbf16>, vector<128x128xbf16>, vector<16x128xf32> -> vector<16x128xf32>
    %c3_22 = arith.constant 3 : index
    %c0_23 = arith.constant 0 : index
    %c0_24 = arith.constant 0 : index
    %34 = vector.load %arg3[%c3_22, %c0_23, %c0_24] : memref<10x1x128xf32, #tpu.memory_space<vmem>>, vector<1x1x128xf32>
    %35 = vector.shape_cast %34 : vector<1x1x128xf32> to vector<1x128xf32>
    %36 = vector.broadcast %35 : vector<1x128xf32> to vector<16x128xf32>
    %37 = arith.addf %33, %36 : vector<16x128xf32>
    %38 = arith.truncf %37 : vector<16x128xf32> to vector<16x128xbf16>
    %39 = math.tanh %38 : vector<16x128xbf16>
    %c4 = arith.constant 4 : index
    %c0_25 = arith.constant 0 : index
    %c0_26 = arith.constant 0 : index
    %40 = vector.load %arg2[%c4, %c0_25, %c0_26] : memref<10x128x128xbf16, #tpu.memory_space<vmem>>, vector<1x128x128xbf16>
    %41 = vector.shape_cast %40 : vector<1x128x128xbf16> to vector<128x128xbf16>
    %cst_27 = arith.constant dense<0.000000e+00> : vector<16x128xf32>
    %42 = tpu.matmul %39, %41, %cst_27 {dimension_numbers = #tpu.dot_dimension_numbers<[1], [0], [0], [1], [0, 0, 1, 1], [], []>} : vector<16x128xbf16>, vector<128x128xbf16>, vector<16x128xf32> -> vector<16x128xf32>
    %c4_28 = arith.constant 4 : index
    %c0_29 = arith.constant 0 : index
    %c0_30 = arith.constant 0 : index
    %43 = vector.load %arg3[%c4_28, %c0_29, %c0_30] : memref<10x1x128xf32, #tpu.memory_space<vmem>>, vector<1x1x128xf32>
    %44 = vector.shape_cast %43 : vector<1x1x128xf32> to vector<1x128xf32>
    %45 = vector.broadcast %44 : vector<1x128xf32> to vector<16x128xf32>
    %46 = arith.addf %42, %45 : vector<16x128xf32>
    %47 = arith.truncf %46 : vector<16x128xf32> to vector<16x128xbf16>
    %48 = math.tanh %47 : vector<16x128xbf16>
    %49 = arith.extf %48 : vector<16x128xbf16> to vector<16x128xf32>
    %50 = arith.addf %29, %49 : vector<16x128xf32>
    %51 = arith.truncf %50 : vector<16x128xf32> to vector<16x128xbf16>
    %c5 = arith.constant 5 : index
    %c0_31 = arith.constant 0 : index
    %c0_32 = arith.constant 0 : index
    %52 = vector.load %arg2[%c5, %c0_31, %c0_32] : memref<10x128x128xbf16, #tpu.memory_space<vmem>>, vector<1x128x128xbf16>
    %53 = vector.shape_cast %52 : vector<1x128x128xbf16> to vector<128x128xbf16>
    %cst_33 = arith.constant dense<0.000000e+00> : vector<16x128xf32>
    %54 = tpu.matmul %51, %53, %cst_33 {dimension_numbers = #tpu.dot_dimension_numbers<[1], [0], [0], [1], [0, 0, 1, 1], [], []>} : vector<16x128xbf16>, vector<128x128xbf16>, vector<16x128xf32> -> vector<16x128xf32>
    %c5_34 = arith.constant 5 : index
    %c0_35 = arith.constant 0 : index
    %c0_36 = arith.constant 0 : index
    %55 = vector.load %arg3[%c5_34, %c0_35, %c0_36] : memref<10x1x128xf32, #tpu.memory_space<vmem>>, vector<1x1x128xf32>
    %56 = vector.shape_cast %55 : vector<1x1x128xf32> to vector<1x128xf32>
    %57 = vector.broadcast %56 : vector<1x128xf32> to vector<16x128xf32>
    %58 = arith.addf %54, %57 : vector<16x128xf32>
    %59 = arith.truncf %58 : vector<16x128xf32> to vector<16x128xbf16>
    %60 = math.tanh %59 : vector<16x128xbf16>
    %c6 = arith.constant 6 : index
    %c0_37 = arith.constant 0 : index
    %c0_38 = arith.constant 0 : index
    %61 = vector.load %arg2[%c6, %c0_37, %c0_38] : memref<10x128x128xbf16, #tpu.memory_space<vmem>>, vector<1x128x128xbf16>
    %62 = vector.shape_cast %61 : vector<1x128x128xbf16> to vector<128x128xbf16>
    %cst_39 = arith.constant dense<0.000000e+00> : vector<16x128xf32>
    %63 = tpu.matmul %60, %62, %cst_39 {dimension_numbers = #tpu.dot_dimension_numbers<[1], [0], [0], [1], [0, 0, 1, 1], [], []>} : vector<16x128xbf16>, vector<128x128xbf16>, vector<16x128xf32> -> vector<16x128xf32>
    %c6_40 = arith.constant 6 : index
    %c0_41 = arith.constant 0 : index
    %c0_42 = arith.constant 0 : index
    %64 = vector.load %arg3[%c6_40, %c0_41, %c0_42] : memref<10x1x128xf32, #tpu.memory_space<vmem>>, vector<1x1x128xf32>
    %65 = vector.shape_cast %64 : vector<1x1x128xf32> to vector<1x128xf32>
    %66 = vector.broadcast %65 : vector<1x128xf32> to vector<16x128xf32>
    %67 = arith.addf %63, %66 : vector<16x128xf32>
    %68 = arith.truncf %67 : vector<16x128xf32> to vector<16x128xbf16>
    %69 = math.tanh %68 : vector<16x128xbf16>
    %70 = arith.extf %69 : vector<16x128xbf16> to vector<16x128xf32>
    %71 = arith.addf %50, %70 : vector<16x128xf32>
    %72 = arith.truncf %71 : vector<16x128xf32> to vector<16x128xbf16>
    %c7 = arith.constant 7 : index
    %c0_43 = arith.constant 0 : index
    %c0_44 = arith.constant 0 : index
    %73 = vector.load %arg2[%c7, %c0_43, %c0_44] : memref<10x128x128xbf16, #tpu.memory_space<vmem>>, vector<1x128x128xbf16>
    %74 = vector.shape_cast %73 : vector<1x128x128xbf16> to vector<128x128xbf16>
    %cst_45 = arith.constant dense<0.000000e+00> : vector<16x128xf32>
    %75 = tpu.matmul %72, %74, %cst_45 {dimension_numbers = #tpu.dot_dimension_numbers<[1], [0], [0], [1], [0, 0, 1, 1], [], []>} : vector<16x128xbf16>, vector<128x128xbf16>, vector<16x128xf32> -> vector<16x128xf32>
    %c7_46 = arith.constant 7 : index
    %c0_47 = arith.constant 0 : index
    %c0_48 = arith.constant 0 : index
    %76 = vector.load %arg3[%c7_46, %c0_47, %c0_48] : memref<10x1x128xf32, #tpu.memory_space<vmem>>, vector<1x1x128xf32>
    %77 = vector.shape_cast %76 : vector<1x1x128xf32> to vector<1x128xf32>
    %78 = vector.broadcast %77 : vector<1x128xf32> to vector<16x128xf32>
    %79 = arith.addf %75, %78 : vector<16x128xf32>
    %80 = arith.truncf %79 : vector<16x128xf32> to vector<16x128xbf16>
    %81 = math.tanh %80 : vector<16x128xbf16>
    %c8 = arith.constant 8 : index
    %c0_49 = arith.constant 0 : index
    %c0_50 = arith.constant 0 : index
    %82 = vector.load %arg2[%c8, %c0_49, %c0_50] : memref<10x128x128xbf16, #tpu.memory_space<vmem>>, vector<1x128x128xbf16>
    %83 = vector.shape_cast %82 : vector<1x128x128xbf16> to vector<128x128xbf16>
    %cst_51 = arith.constant dense<0.000000e+00> : vector<16x128xf32>
    %84 = tpu.matmul %81, %83, %cst_51 {dimension_numbers = #tpu.dot_dimension_numbers<[1], [0], [0], [1], [0, 0, 1, 1], [], []>} : vector<16x128xbf16>, vector<128x128xbf16>, vector<16x128xf32> -> vector<16x128xf32>
    %c8_52 = arith.constant 8 : index
    %c0_53 = arith.constant 0 : index
    %c0_54 = arith.constant 0 : index
    %85 = vector.load %arg3[%c8_52, %c0_53, %c0_54] : memref<10x1x128xf32, #tpu.memory_space<vmem>>, vector<1x1x128xf32>
    %86 = vector.shape_cast %85 : vector<1x1x128xf32> to vector<1x128xf32>
    %87 = vector.broadcast %86 : vector<1x128xf32> to vector<16x128xf32>
    %88 = arith.addf %84, %87 : vector<16x128xf32>
    %89 = arith.truncf %88 : vector<16x128xf32> to vector<16x128xbf16>
    %90 = math.tanh %89 : vector<16x128xbf16>
    %91 = arith.extf %90 : vector<16x128xbf16> to vector<16x128xf32>
    %92 = arith.addf %71, %91 : vector<16x128xf32>
    %93 = arith.truncf %92 : vector<16x128xf32> to vector<16x128xbf16>
    %c9 = arith.constant 9 : index
    %c0_55 = arith.constant 0 : index
    %c0_56 = arith.constant 0 : index
    %94 = vector.load %arg2[%c9, %c0_55, %c0_56] : memref<10x128x128xbf16, #tpu.memory_space<vmem>>, vector<1x128x128xbf16>
    %95 = vector.shape_cast %94 : vector<1x128x128xbf16> to vector<128x128xbf16>
    %cst_57 = arith.constant dense<0.000000e+00> : vector<16x128xf32>
    %96 = tpu.matmul %93, %95, %cst_57 {dimension_numbers = #tpu.dot_dimension_numbers<[1], [0], [0], [1], [0, 0, 1, 1], [], []>} : vector<16x128xbf16>, vector<128x128xbf16>, vector<16x128xf32> -> vector<16x128xf32>
    %c9_58 = arith.constant 9 : index
    %c0_59 = arith.constant 0 : index
    %c0_60 = arith.constant 0 : index
    %97 = vector.load %arg3[%c9_58, %c0_59, %c0_60] : memref<10x1x128xf32, #tpu.memory_space<vmem>>, vector<1x1x128xf32>
    %98 = vector.shape_cast %97 : vector<1x1x128xf32> to vector<1x128xf32>
    %99 = vector.broadcast %98 : vector<1x128xf32> to vector<16x128xf32>
    %100 = arith.addf %96, %99 : vector<16x128xf32>
    %101 = math.tanh %100 : vector<16x128xf32>
    %102 = arith.truncf %101 : vector<16x128xf32> to vector<16x128xbf16>
    %c0_61 = arith.constant 0 : index
    %c0_62 = arith.constant 0 : index
    %103 = vector.load %arg4[%c0_61, %c0_62] : memref<16x128xbf16, #tpu.memory_space<vmem>>, vector<16x128xbf16>
    tpu.vector_store %arg4[%c0_61, %c0_62], %102 {strides = array<i32>} : memref<16x128xbf16, #tpu.memory_space<vmem>>, vector<16x128xbf16>,
    return
  }
  func.func @transform_0(%arg0: i32) -> (i32, i32) {
    %c0_i32 = arith.constant 0 : i32
    %c0_i32_0 = arith.constant 0 : i32
    return %arg0, %c0_i32 : i32, i32
  }
  func.func @transform_1(%arg0: i32) -> (i32, i32, i32) {
    %c0_i32 = arith.constant 0 : i32
    %c0_i32_0 = arith.constant 0 : i32
    %c0_i32_1 = arith.constant 0 : i32
    %c0_i32_2 = arith.constant 0 : i32
    return %c0_i32, %c0_i32_0, %c0_i32_1 : i32, i32, i32
  }
  func.func @transform_2(%arg0: i32) -> (i32, i32, i32) {
    %c0_i32 = arith.constant 0 : i32
    %c0_i32_0 = arith.constant 0 : i32
    %c0_i32_1 = arith.constant 0 : i32
    %c0_i32_2 = arith.constant 0 : i32
    return %c0_i32, %c0_i32_0, %c0_i32_1 : i32, i32, i32
  }
  func.func @transform_3(%arg0: i32) -> (i32, i32) {
    %c0_i32 = arith.constant 0 : i32
    %c0_i32_0 = arith.constant 0 : i32
    return %arg0, %c0_i32 : i32, i32
  }
}

</mosaic_0001>

<bundles_post_ra>
// kernel: actor_forward.1
= control target key start
LH: loop header
LB: loop body
LE: loop exit
PB: predicated region body
PF: predicated region fallthrough
CT: control target
= control target key end

     0   :  { %8 = vsyncpa [#allocation3], 0  ;;  %s2012_s12 = smov 0   ;;  %s2236_s0 = inlined_call_operand.vmem [shape: bf16[32,64], index: 0, kind: input, shape index: {}]   ;;  %s2237_s1 = inlined_call_operand.hbm [shape: bf16[10,128,128], index: 1, kind: input, shape index: {}]   ;;  %s2238_s2 = inlined_call_operand.vmem [shape: f32[10,1,128], index: 2, kind: input, shape index: {}]   ;;  %s2239_s3 = inlined_call_operand.vmem [shape: bf16[32,128], index: 3, kind: output, shape index: {}]  }
   0x1 LB: > { %s1426_s13 = sadd.s32 4294967295, %s1985_s12   ;;  %p1428_p0 = scmp.ge.s32.totalorder %s1985_s12, 1  ;;  %s1985_s12 = sphi %s2012_s12, %s14_s12  }
   0x2   : > { %p113_p1 = scmp.lt.s32.totalorder %s1985_s12, 3  ;;  %s1987_s14 = smov [#allocation2]  }
   0x3   : > { %s125_s15 = sshll.u32 %s1987_s14, 4  ;;  %p2026_p3 = scmp.eq.s32.totalorder %s1426_s13, 0  ;;  %s126_s15 = int_to_ptr.vmem [resolvable:$true] %s125_s15 }
   0x4   : > { %p2020_p2 = pnand %p1428_p0, %p113_p1  ;;  %s1947_s21 = scalar_lea.hbm %s2237_s1, 10240 }
   0x5   : > { %s2244_s17 = scalar_select %p2026_p3, 1, 0 }
   0x6   : > { %s2243_s16 = scalar_select %p2020_p2, 1, 0 }
   0x7   : > { %p1827_p4 = pneg %p2020_p2  ;;  %p1948_p6 = scmp.ne.s32.totalorder %s2237_s1, %s1947_s21 }
   0x8   : > { %p1954_p10 = scmp.lt.u32.totalorder %s1947_s21, %s2237_s1 }
   0x9   : > { %p2034_p5 = pnand %p2026_p3, %p1827_p4 }
   0xb   : > { %p1949_p7 = pneg %p2034_p5 }
   0xd   : > { %p1950_p8 = pnand %p1949_p7, %p1948_p6 }
   0xf   : > { %p1951_p9 = pneg %p1950_p8 }
  0x11   : > { %p1956_p11 = pnand %p1954_p10, %p1951_p9 }
  0x13   : > { %1959 = shalt.err (!%p1956_p11)
}
  0x14   : > { %s1960_s26 = scalar_lea.vmem %s126_s15, 10240  ;;  %p1968_p1 = scmp.lt.s32.totalorder %s126_s15, %s126_s15 }
  0x15   : > { %p1961_p12 = scmp.ne.s32.totalorder %s126_s15, %s1960_s26  ;;  %p1969_p4 = scmp.lt.s32.totalorder %s1960_s26, %s1960_s26 }
  0x17   : > { %p1963_p13 = pnand %p1961_p12, %p1949_p7  ;;  %p1970_p3 = por %p1969_p4, %p1968_p1 }
  0x19   : > { %p1964_p0 = pneg %p1963_p13 }
  0x1b   : > { %p1971_p2 = pnand %p1970_p3, %p1964_p0 }
  0x1d   : > { %1974 = shalt.err (!%p1971_p2)
}
  0x1e   : > { %s1988_s27 = smov 64   ;;  %s1989_s28 = smov 4  }
  0x1f   : > { %1830 = dma.hbm_to_vmem [thread:$0]  (!%p2034_p5), %s2237_s1, 10240, %s126_s15, [#allocation3], %s1988_s27, %s1988_s27, %s1989_s28  }
  0x20   : > { %p2246_p6 = scmp.ne.s32.totalorder %s2243_s16, 0 }
  0x21   : > { %p2247_p8 = scmp.ne.s32.totalorder (!%p2246_p6), %s2244_s17, 0 }
  0x22   : > { %153 = sbr.rel (%p2246_p6) target bundleno = 2383 (0x94f), region = 32 }
  0x29   : > { %1980 = dma.done.wait (%p2247_p8), [#allocation3], 10240  }
  0x2a   : > { %1982 = vsyncadd (%p2247_p8), [#allocation3], 4294957056  ;;  %s1433_s4 = sshll.u32 %s1426_s13, 1  ;;  %v1990_v0 = vmov 0.0   ;;  %vm1991_vm0 = vmmov 0   ;;  %v1846_v1 = vld [vmem:[#allocation2] sm:$0xff]  }
  0x2b   : > { %1631 = vmatprep.subr.bf16.mxu0 %v1990_v0  ;;  %1639 = vmatprep.mubr.msk.bf16.mxu0 %vm1991_vm0, %v1990_v0  ;;  %p178_p2 = scmp.lt.s32.totalorder %s1433_s4, 3  ;;  %v1847_v2 = vld [vmem:[#allocation2 + $0x8] sm:$0xff]   ;;  %v1851_v3 = vld [vmem:[#allocation2 + $0x40] sm:$0xff]   ;;  %v1848_v4 = vld [vmem:[#allocation2 + $0x10] sm:$0xff]   ;;  %vm236_vm1 = vcmask 523264  }
  0x2c   : > { %1643 = vmatprep.subr.bf16.mxu1 %v1990_v0  ;;  %1659 = vmatprep.mubr.msk.bf16.mxu1 %vm1991_vm0, %v1990_v0  ;;  %v1852_v5 = vld [vmem:[#allocation2 + $0x48] sm:$0xff]   ;;  %v1849_v6 = vld [vmem:[#allocation2 + $0x18] sm:$0xff]   ;;  %v1853_v7 = vld [vmem:[#allocation2 + $0x50] sm:$0xff]  }
  0x2d   : > { %s2249_s4 = smov (!%p178_p2, %s1433_s4), 3  ;;  %1632 = vmatpush3.bf16.msra.mxu0 %v1846_v1  ;;  %1644 = vmatpush3.bf16.msra.mxu1 %v1851_v3  ;;  %v1854_v9 = vld [vmem:[#allocation2 + $0x58] sm:$0xff]   ;;  %v1855_v10 = vld [vmem:[#allocation2 + $0x60] sm:$0xff]   ;;  %v1856_v11 = vld [vmem:[#allocation2 + $0x68] sm:$0xff]  }
  0x2e   : > { %s1434_s5 = sshll.u32 %s2249_s4, 2  ;;  %1633 = vmatprep.subr.bf16.mxu0 %v1990_v0  ;;  %1645 = vmatprep.subr.bf16.mxu1 %v1990_v0  ;;  %v1857_v12 = vld [vmem:[#allocation2 + $0x70] sm:$0xff]   ;;  %v1858_v13 = vld [vmem:[#allocation2 + $0x78] sm:$0xff]   ;;  %v1859_v14 = vld [vmem:[#allocation2 + $0x80] sm:$0xff]  }
  0x2f   : > { %s181_s8 = scalar_lea.vmem %s2236_s0, %s1434_s5  ;;  %v1860_v15 = vld [vmem:[#allocation2 + $0x88] sm:$0xff]   ;;  %v1861_v16 = vld [vmem:[#allocation2 + $0x90] sm:$0xff]   ;;  %v1437_v17 = vld [vmem:[%s2238_s2] ss:$0 sm:$0xff]  ;;  %s187_s7 = scalar_lea.vmem %s2239_s3, %s1434_s5 }
  0x30   : > { %v1850_v8 = vld [vmem:[%s181_s8] sm:$0xff]   ;;  %v1862_v27 = vld [vmem:[#allocation2 + $0x98] sm:$0xff]   ;;  %v1864_v29 = vld [vmem:[#allocation2 + $0xa8] sm:$0xff]  }
  0x31   : > { %1634 = vmatpush3.bf16.msra.mxu0 %v1847_v2  ;;  %1646 = vmatpush3.bf16.msra.mxu1 %v1852_v5  ;;  %v1863_v28 = vld [vmem:[#allocation2 + $0xa0] sm:$0xff]   ;;  %v1865_v30 = vld [vmem:[#allocation2 + $0xb0] sm:$0xff]   ;;  %v1866_v31 = vld [vmem:[#allocation2 + $0xb8] sm:$0xff]  }
  0x32   : > { %1635 = vmatprep.subr.bf16.mxu0 %v1990_v0  ;;  %1647 = vmatprep.subr.bf16.mxu1 %v1990_v0  ;;  %v1867_v32 = vld [vmem:[#allocation2 + $0xc0] sm:$0xff]   ;;  %v1868_v33 = vld [vmem:[#allocation2 + $0xc8] sm:$0xff]   ;;  %v1869_v43 = vld [vmem:[#allocation2 + $0xd0] sm:$0xff]  }
  0x33   : > { %v1445_v34 = vld [vmem:[%s2238_s2 + $0x1] ss:$0 sm:$0xff]  ;;  %v1870_v44 = vld [vmem:[#allocation2 + $0xd8] sm:$0xff]   ;;  %v1872_v46 = vld [vmem:[#allocation2 + $0xe8] sm:$0xff]  }
  0x34   : > { %v1871_v45 = vld [vmem:[#allocation2 + $0xe0] sm:$0xff]   ;;  %v1873_v47 = vld [vmem:[#allocation2 + $0xf0] sm:$0xff]   ;;  %v1874_v48 = vld [vmem:[#allocation2 + $0xf8] sm:$0xff]  }
  0x35   : > { %1636 = vmatpush3.bf16.msra.mxu0 %v1848_v4  ;;  %1648 = vmatpush3.bf16.msra.mxu1 %v1853_v7  ;;  %v1875_v49 = vld [vmem:[#allocation2 + $0x100] sm:$0xff]   ;;  %v1876_v50 = vld [vmem:[#allocation2 + $0x108] sm:$0xff]   ;;  %v1877_v51 = vld [vmem:[#allocation2 + $0x110] sm:$0xff]  }
  0x36   : > { %1637 = vmatprep.subr.bf16.mxu0 %v1990_v0  ;;  %1649 = vmatprep.subr.bf16.mxu1 %v1990_v0  ;;  %v1455_v52 = vld [vmem:[%s2238_s2 + $0x2] ss:$0 sm:$0xff]  ;;  %v1878_v3 = vld [vmem:[#allocation2 + $0x118] sm:$0xff]   ;;  %v1880_v5 = vld [vmem:[#allocation2 + $0x128] sm:$0xff]  }
  0x37   : > { %v1879_v4 = vld [vmem:[#allocation2 + $0x120] sm:$0xff]   ;;  %v1882_v7 = vld [vmem:[#allocation2 + $0x138] sm:$0xff]  }
  0x39   : > { %1638 = vmatpush3.bf16.msra.mxu0 %v1849_v6  ;;  %1650 = vmatpush3.bf16.msra.mxu1 %v1854_v9  ;;  %v1881_v6 = vld [vmem:[#allocation2 + $0x130] sm:$0xff]   ;;  %v1884_v9 = vld [vmem:[#allocation2 + $0x148] sm:$0xff]  }
  0x3a   : > { %1663 = vmatprep.subr.bf16.mxu0 %v1990_v0  ;;  %1651 = vmatprep.subr.bf16.mxu1 %v1990_v0 }
  0x3c   : > { %1640 = vmatmul.mubr.msk.bf16.vlgmr.msra.gmra.mrb[0].mxu0 %vm236_vm1, %v1850_v8  ;;  %v1883_v8 = vld [vmem:[#allocation2 + $0x140] sm:$0xff]  }
  0x3d   : > { %1679 = vmatprep.mubr.msk.bf16.mxu0 %vm1991_vm0, %v1990_v0  ;;  %1652 = vmatpush3.bf16.msra.mxu1 %v1855_v10  ;;  %v1465_v10 = vld [vmem:[%s2238_s2 + $0x3] ss:$0 sm:$0xff] }
  0x3e   : > { %1653 = vmatprep.subr.bf16.mxu1 %v1990_v0  ;;  %1664 = vmatpush3.bf16.msra.mxu0 %v1859_v14 }
  0x3f   : > { %1665 = vmatprep.subr.bf16.mxu0 %v1990_v0 }
  0x41   : > { %1654 = vmatpush3.bf16.msra.mxu1 %v1856_v11 }
  0x42   : > { %1655 = vmatprep.subr.bf16.mxu1 %v1990_v0  ;;  %1666 = vmatpush3.bf16.msra.mxu0 %v1860_v15 }
  0x43   : > { %1667 = vmatprep.subr.bf16.mxu0 %v1990_v0 }
  0x45   : > { %1656 = vmatpush3.bf16.msra.mxu1 %v1857_v12 }
  0x46   : > { %1657 = vmatprep.subr.bf16.mxu1 %v1990_v0  ;;  %1668 = vmatpush3.bf16.msra.mxu0 %v1861_v16 }
  0x47   : > { %1669 = vmatprep.subr.bf16.mxu0 %v1990_v0 }
  0x49   : > { %1658 = vmatpush3.bf16.msra.mxu1 %v1858_v13 }
  0x4a   : > { %1683 = vmatprep.subr.bf16.mxu1 %v1990_v0  ;;  %1670 = vmatpush3.bf16.msra.mxu0 %v1862_v27  ;;  %v1893_v27 = vld [vmem:[#allocation2 + $0x190] sm:$0xff]  }
  0x4b   : > { %1671 = vmatprep.subr.bf16.mxu0 %v1990_v0 }
  0x4e   : > { %1672 = vmatpush3.bf16.msra.mxu0 %v1863_v28  ;;  %v1475_v28 = vld [vmem:[%s2238_s2 + $0x4] ss:$0 sm:$0xff] }
  0x4f   : > { %1673 = vmatprep.subr.bf16.mxu0 %v1990_v0 }
  0x52   : > { %1674 = vmatpush3.bf16.msra.mxu0 %v1864_v29 }
  0x53   : > { %1675 = vmatprep.subr.bf16.mxu0 %v1990_v0 }
  0x56   : > { %1676 = vmatpush3.bf16.msra.mxu0 %v1865_v30 }
  0x57   : > { %1677 = vmatprep.subr.bf16.mxu0 %v1990_v0 }
  0x5a   : > { %1678 = vmatpush3.bf16.msra.mxu0 %v1866_v31 }
  0x5b   : > { %1703 = vmatprep.subr.bf16.mxu0 %v1990_v0 }
 0x10f   : > { %v274_v18 = vpop.f32.mrb[0].mxu0 }
 0x110   : > { %v275_v19 = vadd.f32 %v1437_v17, %v274_v18  ;;  %v1641_v20 = vpop.f32.mrb[1].mxu0 }
 0x111   : > { %v277_v21 = vpop.f32.mrb[2].mxu0  ;;  %v1886_v20 = vld [vmem:[#allocation2 + $0x158] sm:$0xff]  }
 0x112   : > { %v278_v22 = vadd.f32 %v1437_v17, %v277_v21  ;;  %v1642_v23 = vpop.f32.mrb[3].mxu0  ;;  %1923 = vtanh.f32 %v275_v19  ;;  %v1885_v19 = vld [vmem:[#allocation2 + $0x150] sm:$0xff]   ;;  %v1887_v21 = vld [vmem:[#allocation2 + $0x160] sm:$0xff]  }
 0x113   : > { %v1889_v23 = vld [vmem:[#allocation2 + $0x170] sm:$0xff]  }
 0x114   : > { %1925 = vtanh.f32 %v278_v22  ;;  %v1888_v22 = vld [vmem:[#allocation2 + $0x168] sm:$0xff]  }
 0x11c   : > { %v2096_v24 = vpop.eup %1923 }
 0x11e   : > { %v2098_v25 = vpop.eup %1925 }
 0x11f   : > { %v283_v26 = vpack.c.bf16 %v2098_v25, %v2096_v24 }
 0x121   : > { %1660 = vmatmul.mubr.bf16.vlgmr.msra.gmra.mrb[0].mxu1 %v283_v26  ;;  %v1892_v26 = vld [vmem:[#allocation2 + $0x188] sm:$0xff]  }
 0x122   : > { %1699 = vmatprep.mubr.msk.bf16.mxu1 %vm1991_vm0, %v1990_v0  ;;  %1684 = vmatpush3.bf16.msra.mxu1 %v1867_v32 }
 0x123   : > { %1685 = vmatprep.subr.bf16.mxu1 %v1990_v0 }
 0x126   : > { %1686 = vmatpush3.bf16.msra.mxu1 %v1868_v33 }
 0x127   : > { %1687 = vmatprep.subr.bf16.mxu1 %v1990_v0 }
 0x12a   : > { %1688 = vmatpush3.bf16.msra.mxu1 %v1869_v43  ;;  %v1895_v43 = vld [vmem:[#allocation2 + $0x1a0] sm:$0xff]  }
 0x12b   : > { %1689 = vmatprep.subr.bf16.mxu1 %v1990_v0 }
 0x12e   : > { %1690 = vmatpush3.bf16.msra.mxu1 %v1870_v44  ;;  %v1896_v44 = vld [vmem:[#allocation2 + $0x1a8] sm:$0xff]  }
 0x12f   : > { %1691 = vmatprep.subr.bf16.mxu1 %v1990_v0 }
 0x132   : > { %1692 = vmatpush3.bf16.msra.mxu1 %v1871_v45  ;;  %v1897_v45 = vld [vmem:[#allocation2 + $0x1b0] sm:$0xff]  }
 0x133   : > { %1693 = vmatprep.subr.bf16.mxu1 %v1990_v0 }
 0x136   : > { %1694 = vmatpush3.bf16.msra.mxu1 %v1872_v46  ;;  %v1898_v46 = vld [vmem:[#allocation2 + $0x1b8] sm:$0xff]  }
 0x137   : > { %1695 = vmatprep.subr.bf16.mxu1 %v1990_v0 }
 0x13a   : > { %1696 = vmatpush3.bf16.msra.mxu1 %v1873_v47  ;;  %v1899_v47 = vld [vmem:[#allocation2 + $0x1c0] sm:$0xff]  }
 0x13b   : > { %1697 = vmatprep.subr.bf16.mxu1 %v1990_v0 }
 0x13e   : > { %1698 = vmatpush3.bf16.msra.mxu1 %v1874_v48  ;;  %v1900_v48 = vld [vmem:[#allocation2 + $0x1c8] sm:$0xff]  }
 0x13f   : > { %1723 = vmatprep.subr.bf16.mxu1 %v1990_v0 }
 0x1f4   : > { %v391_v35 = vpop.f32.mrb[0].mxu1 }
 0x1f5   : > { %v1661_v36 = vpop.f32.mrb[1].mxu1  ;;  %v392_v38 = vadd.f32 %v1445_v34, %v391_v35 }
 0x1f6   : > { %v394_v37 = vpop.f32.mrb[2].mxu1 }
 0x1f7   : > { %v395_v39 = vadd.f32 %v1445_v34, %v394_v37  ;;  %v1662_v40 = vpop.f32.mrb[3].mxu1 }
 0x1f9   : > { %v398_v41 = vpack.c.bf16 %v395_v39, %v392_v38 }
 0x1fb   : > { %1927 = vtanh.bf16 %v398_v41 }
 0x206   : > { %v1928_v42 = vpop.eup %1927 }
 0x207   : > { %1680 = vmatmul.mubr.bf16.vlgmr.msra.gmra.mrb[4].mxu0 %v1928_v42  ;;  %v1894_v42 = vld [vmem:[#allocation2 + $0x198] sm:$0xff]  }
 0x208   : > { %1719 = vmatprep.mubr.msk.bf16.mxu0 %vm1991_vm0, %v1990_v0  ;;  %1704 = vmatpush3.bf16.msra.mxu0 %v1875_v49  ;;  %v1485_v49 = vld [vmem:[%s2238_s2 + $0x5] ss:$0 sm:$0xff] }
 0x209   : > { %1705 = vmatprep.subr.bf16.mxu0 %v1990_v0 }
 0x20c   : > { %1706 = vmatpush3.bf16.msra.mxu0 %v1876_v50 }
 0x20d   : > { %1707 = vmatprep.subr.bf16.mxu0 %v1990_v0 }
 0x210   : > { %1708 = vmatpush3.bf16.msra.mxu0 %v1877_v51 }
 0x211   : > { %1709 = vmatprep.subr.bf16.mxu0 %v1990_v0 }
 0x214   : > { %1710 = vmatpush3.bf16.msra.mxu0 %v1878_v3  ;;  %v1909_v3 = vld [vmem:[#allocation2 + $0x210] sm:$0xff]  }
 0x215   : > { %1711 = vmatprep.subr.bf16.mxu0 %v1990_v0 }
 0x218   : > { %1712 = vmatpush3.bf16.msra.mxu0 %v1879_v4  ;;  %v1495_v4 = vld [vmem:[%s2238_s2 + $0x6] ss:$0 sm:$0xff] }
 0x219   : > { %1713 = vmatprep.subr.bf16.mxu0 %v1990_v0 }
 0x21c   : > { %1714 = vmatpush3.bf16.msra.mxu0 %v1880_v5 }
 0x21d   : > { %1715 = vmatprep.subr.bf16.mxu0 %v1990_v0 }
 0x220   : > { %1716 = vmatpush3.bf16.msra.mxu0 %v1881_v6 }
 0x221   : > { %1717 = vmatprep.subr.bf16.mxu0 %v1990_v0 }
 0x224   : > { %1718 = vmatpush3.bf16.msra.mxu0 %v1882_v7 }
 0x225   : > { %1743 = vmatprep.subr.bf16.mxu0 %v1990_v0 }
 0x2da   : > { %v507_v53 = vpop.f32.mrb[4].mxu0 }
 0x2db   : > { %v1681_v54 = vpop.f32.mrb[5].mxu0  ;;  %v508_v56 = vadd.f32 %v1455_v52, %v507_v53 }
 0x2dc   : > { %v510_v55 = vpop.f32.mrb[6].mxu0 }
 0x2dd   : > { %v511_v57 = vadd.f32 %v1455_v52, %v510_v55  ;;  %v1682_v58 = vpop.f32.mrb[7].mxu0 }
 0x2de   : > { %v1901_v58 = vld [vmem:[#allocation2 + $0x1d0] sm:$0xff]  }
 0x2df   : > { %v514_v59 = vpack.c.bf16 %v511_v57, %v508_v56 }
 0x2e1   : > { %1929 = vtanh.bf16 %v514_v59  ;;  %v1902_v59 = vld [vmem:[#allocation2 + $0x1d8] sm:$0xff]  }
 0x2ec   : > { %v1930_v60 = vpop.eup %1929 }
 0x2ed   : > { %v516_v61 = vunpack.c.l.bf16 %v1930_v60  ;;  %v517_v62 = vunpack.c.h.bf16 %v1930_v60  ;;  %v1903_v60 = vld [vmem:[#allocation2 + $0x1e0] sm:$0xff]  }
 0x2ef   : > { %v2129_v63 = vadd.f32 %v2096_v24, %v516_v61  ;;  %v2132_v1 = vadd.f32 %v2098_v25, %v517_v62  ;;  %v1890_v24 = vld [vmem:[#allocation2 + $0x178] sm:$0xff]   ;;  %v1891_v25 = vld [vmem:[#allocation2 + $0x180] sm:$0xff]   ;;  %v1904_v61 = vld [vmem:[#allocation2 + $0x1e8] sm:$0xff]  }
 0x2f0   : > { %v1905_v62 = vld [vmem:[#allocation2 + $0x1f0] sm:$0xff]  }
 0x2f1   : > { %v520_v2 = vpack.c.bf16 %v2132_v1, %v2129_v63 }
 0x2f3   : > { %1700 = vmatmul.mubr.bf16.vlgmr.msra.gmra.mrb[4].mxu1 %v520_v2  ;;  %v1908_v2 = vld [vmem:[#allocation2 + $0x208] sm:$0xff]  }
 0x2f4   : > { %1739 = vmatprep.mubr.msk.bf16.mxu1 %vm1991_vm0, %v1990_v0  ;;  %1724 = vmatpush3.bf16.msra.mxu1 %v1883_v8 }
 0x2f5   : > { %1725 = vmatprep.subr.bf16.mxu1 %v1990_v0 }
 0x2f8   : > { %1726 = vmatpush3.bf16.msra.mxu1 %v1884_v9 }
 0x2f9   : > { %1727 = vmatprep.subr.bf16.mxu1 %v1990_v0 }
 0x2fc   : > { %1728 = vmatpush3.bf16.msra.mxu1 %v1885_v19  ;;  %v1911_v19 = vld [vmem:[#allocation2 + $0x220] sm:$0xff]  }
 0x2fd   : > { %1729 = vmatprep.subr.bf16.mxu1 %v1990_v0 }
 0x300   : > { %1730 = vmatpush3.bf16.msra.mxu1 %v1886_v20  ;;  %v1912_v20 = vld [vmem:[#allocation2 + $0x228] sm:$0xff]  }
 0x301   : > { %1731 = vmatprep.subr.bf16.mxu1 %v1990_v0 }
 0x304   : > { %1732 = vmatpush3.bf16.msra.mxu1 %v1887_v21  ;;  %v1913_v21 = vld [vmem:[#allocation2 + $0x230] sm:$0xff]  }
 0x305   : > { %1733 = vmatprep.subr.bf16.mxu1 %v1990_v0 }
 0x308   : > { %1734 = vmatpush3.bf16.msra.mxu1 %v1888_v22  ;;  %v1914_v22 = vld [vmem:[#allocation2 + $0x238] sm:$0xff]  }
 0x309   : > { %1735 = vmatprep.subr.bf16.mxu1 %v1990_v0 }
 0x30c   : > { %1736 = vmatpush3.bf16.msra.mxu1 %v1889_v23  ;;  %v1915_v23 = vld [vmem:[#allocation2 + $0x240] sm:$0xff]  }
 0x30d   : > { %1737 = vmatprep.subr.bf16.mxu1 %v1990_v0 }
 0x310   : > { %1738 = vmatpush3.bf16.msra.mxu1 %v1890_v24  ;;  %v1916_v24 = vld [vmem:[#allocation2 + $0x248] sm:$0xff]  }
 0x311   : > { %1763 = vmatprep.subr.bf16.mxu1 %v1990_v0 }
 0x3c6   : > { %v628_v11 = vpop.f32.mrb[4].mxu1 }
 0x3c7   : > { %v1701_v12 = vpop.f32.mrb[5].mxu1  ;;  %v629_v14 = vadd.f32 %v1465_v10, %v628_v11 }
 0x3c8   : > { %v631_v13 = vpop.f32.mrb[6].mxu1 }
 0x3c9   : > { %v632_v15 = vadd.f32 %v1465_v10, %v631_v13  ;;  %v1702_v16 = vpop.f32.mrb[7].mxu1 }
 0x3cb   : > { %v635_v17 = vpack.c.bf16 %v632_v15, %v629_v14 }
 0x3cd   : > { %1931 = vtanh.bf16 %v635_v17 }
 0x3d8   : > { %v1932_v18 = vpop.eup %1931 }
 0x3d9   : > { %1720 = vmatmul.mubr.bf16.vlgmr.msra.gmra.mrb[8].mxu0 %v1932_v18  ;;  %v1910_v18 = vld [vmem:[#allocation2 + $0x218] sm:$0xff]  }
 0x3da   : > { %1759 = vmatprep.mubr.msk.bf16.mxu0 %vm1991_vm0, %v1990_v0  ;;  %1744 = vmatpush3.bf16.msra.mxu0 %v1891_v25  ;;  %v1505_v25 = vld [vmem:[%s2238_s2 + $0x7] ss:$0 sm:$0xff] }
 0x3db   : > { %1745 = vmatprep.subr.bf16.mxu0 %v1990_v0 }
 0x3de   : > { %1746 = vmatpush3.bf16.msra.mxu0 %v1892_v26 }
 0x3df   : > { %1747 = vmatprep.subr.bf16.mxu0 %v1990_v0 }
 0x3e2   : > { %1748 = vmatpush3.bf16.msra.mxu0 %v1893_v27 }
 0x3e3   : > { %1749 = vmatprep.subr.bf16.mxu0 %v1990_v0 }
 0x3e6   : > { %1750 = vmatpush3.bf16.msra.mxu0 %v1894_v42 }
 0x3e7   : > { %1751 = vmatprep.subr.bf16.mxu0 %v1990_v0 }
 0x3ea   : > { %1752 = vmatpush3.bf16.msra.mxu0 %v1895_v43 }
 0x3eb   : > { %1753 = vmatprep.subr.bf16.mxu0 %v1990_v0 }
 0x3ee   : > { %1754 = vmatpush3.bf16.msra.mxu0 %v1896_v44 }
 0x3ef   : > { %1755 = vmatprep.subr.bf16.mxu0 %v1990_v0 }
 0x3f2   : > { %1756 = vmatpush3.bf16.msra.mxu0 %v1897_v45 }
 0x3f3   : > { %1757 = vmatprep.subr.bf16.mxu0 %v1990_v0 }
 0x3f6   : > { %1758 = vmatpush3.bf16.msra.mxu0 %v1898_v46 }
 0x3f7   : > { %1783 = vmatprep.subr.bf16.mxu0 %v1990_v0 }
 0x4ac   : > { %v744_v29 = vpop.f32.mrb[8].mxu0 }
 0x4ad   : > { %v1721_v30 = vpop.f32.mrb[9].mxu0  ;;  %v745_v32 = vadd.f32 %v1475_v28, %v744_v29 }
 0x4ae   : > { %v747_v31 = vpop.f32.mrb[10].mxu0 }
 0x4af   : > { %v748_v33 = vadd.f32 %v1475_v28, %v747_v31  ;;  %v1722_v34 = vpop.f32.mrb[11].mxu0 }
 0x4b0   : > { %v1917_v34 = vld [vmem:[#allocation2 + $0x250] sm:$0xff]  }
 0x4b1   : > { %v751_v35 = vpack.c.bf16 %v748_v33, %v745_v32 }
 0x4b3   : > { %1933 = vtanh.bf16 %v751_v35  ;;  %v1918_v35 = vld [vmem:[#allocation2 + $0x258] sm:$0xff]  }
 0x4be   : > { %v1934_v36 = vpop.eup %1933 }
 0x4bf   : > { %v753_v37 = vunpack.c.l.bf16 %v1934_v36  ;;  %v754_v38 = vunpack.c.h.bf16 %v1934_v36  ;;  %v1919_v36 = vld [vmem:[#allocation2 + $0x260] sm:$0xff]  }
 0x4c1   : > { %v2163_v39 = vadd.f32 %v753_v37, %v2129_v63  ;;  %v2166_v40 = vadd.f32 %v754_v38, %v2132_v1  ;;  %v1906_v63 = vld [vmem:[#allocation2 + $0x1f8] sm:$0xff]   ;;  %v1907_v1 = vld [vmem:[#allocation2 + $0x200] sm:$0xff]   ;;  %v1920_v37 = vld [vmem:[#allocation2 + $0x268] sm:$0xff]  }
 0x4c2   : > { %v1921_v38 = vld [vmem:[#allocation2 + $0x270] sm:$0xff]  }
 0x4c3   : > { %v757_v41 = vpack.c.bf16 %v2166_v40, %v2163_v39 }
 0x4c5   : > { %1740 = vmatmul.mubr.bf16.vlgmr.msra.gmra.mrb[8].mxu1 %v757_v41 }
 0x4c6   : > { %1779 = vmatprep.mubr.msk.bf16.mxu1 %vm1991_vm0, %v1990_v0  ;;  %1764 = vmatpush3.bf16.msra.mxu1 %v1899_v47 }
 0x4c7   : > { %1765 = vmatprep.subr.bf16.mxu1 %v1990_v0 }
 0x4ca   : > { %1766 = vmatpush3.bf16.msra.mxu1 %v1900_v48 }
 0x4cb   : > { %1767 = vmatprep.subr.bf16.mxu1 %v1990_v0 }
 0x4ce   : > { %1768 = vmatpush3.bf16.msra.mxu1 %v1901_v58 }
 0x4cf   : > { %1769 = vmatprep.subr.bf16.mxu1 %v1990_v0 }
 0x4d2   : > { %1770 = vmatpush3.bf16.msra.mxu1 %v1902_v59 }
 0x4d3   : > { %1771 = vmatprep.subr.bf16.mxu1 %v1990_v0 }
 0x4d6   : > { %1772 = vmatpush3.bf16.msra.mxu1 %v1903_v60 }
 0x4d7   : > { %1773 = vmatprep.subr.bf16.mxu1 %v1990_v0 }
 0x4da   : > { %1774 = vmatpush3.bf16.msra.mxu1 %v1904_v61 }
 0x4db   : > { %1775 = vmatprep.subr.bf16.mxu1 %v1990_v0 }
 0x4de   : > { %1776 = vmatpush3.bf16.msra.mxu1 %v1905_v62 }
 0x4df   : > { %1777 = vmatprep.subr.bf16.mxu1 %v1990_v0 }
 0x4e2   : > { %1778 = vmatpush3.bf16.msra.mxu1 %v1906_v63 }
 0x4e3   : > { %1803 = vmatprep.subr.bf16.mxu1 %v1990_v0 }
 0x598   : > { %v865_v50 = vpop.f32.mrb[8].mxu1 }
 0x599   : > { %v1741_v51 = vpop.f32.mrb[9].mxu1  ;;  %v866_v53 = vadd.f32 %v1485_v49, %v865_v50 }
 0x59a   : > { %v868_v52 = vpop.f32.mrb[10].mxu1 }
 0x59b   : > { %v869_v54 = vadd.f32 %v1485_v49, %v868_v52  ;;  %v1742_v55 = vpop.f32.mrb[11].mxu1 }
 0x59d   : > { %v872_v56 = vpack.c.bf16 %v869_v54, %v866_v53  ;;  %v1525_v53 = vld [vmem:[%s2238_s2 + $0x9] ss:$0 sm:$0xff] }
 0x59f   : > { %1935 = vtanh.bf16 %v872_v56 }
 0x5aa   : > { %v1936_v57 = vpop.eup %1935 }
 0x5ab   : > { %1760 = vmatmul.mubr.bf16.vlgmr.msra.gmra.mrb[12].mxu0 %v1936_v57 }
 0x5ac   : > { %1799 = vmatprep.mubr.msk.bf16.mxu0 %vm1991_vm0, %v1990_v0  ;;  %1784 = vmatpush3.bf16.msra.mxu0 %v1907_v1 }
 0x5ad   : > { %1785 = vmatprep.subr.bf16.mxu0 %v1990_v0 }
 0x5b0   : > { %1786 = vmatpush3.bf16.msra.mxu0 %v1908_v2 }
 0x5b1   : > { %1787 = vmatprep.subr.bf16.mxu0 %v1990_v0 }
 0x5b4   : > { %1788 = vmatpush3.bf16.msra.mxu0 %v1909_v3 }
 0x5b5   : > { %1789 = vmatprep.subr.bf16.mxu0 %v1990_v0 }
 0x5b8   : > { %1790 = vmatpush3.bf16.msra.mxu0 %v1910_v18 }
 0x5b9   : > { %1791 = vmatprep.subr.bf16.mxu0 %v1990_v0 }
 0x5bc   : > { %1792 = vmatpush3.bf16.msra.mxu0 %v1911_v19 }
 0x5bd   : > { %1793 = vmatprep.subr.bf16.mxu0 %v1990_v0 }
 0x5c0   : > { %1794 = vmatpush3.bf16.msra.mxu0 %v1912_v20 }
 0x5c1   : > { %1795 = vmatprep.subr.bf16.mxu0 %v1990_v0 }
 0x5c4   : > { %1796 = vmatpush3.bf16.msra.mxu0 %v1913_v21 }
 0x5c5   : > { %1797 = vmatprep.subr.bf16.mxu0 %v1990_v0 }
 0x5c8   : > { %1798 = vmatpush3.bf16.msra.mxu0 %v1914_v22 }
 0x67e   : > { %v981_v5 = vpop.f32.mrb[12].mxu0 }
 0x67f   : > { %v1761_v6 = vpop.f32.mrb[13].mxu0  ;;  %v982_v8 = vadd.f32 %v1495_v4, %v981_v5 }
 0x680   : > { %v984_v7 = vpop.f32.mrb[14].mxu0 }
 0x681   : > { %v985_v9 = vadd.f32 %v1495_v4, %v984_v7  ;;  %v1762_v10 = vpop.f32.mrb[15].mxu0 }
 0x683   : > { %v988_v11 = vpack.c.bf16 %v985_v9, %v982_v8 }
 0x685   : > { %1937 = vtanh.bf16 %v988_v11 }
 0x690   : > { %v1938_v12 = vpop.eup %1937 }
 0x691   : > { %v990_v13 = vunpack.c.l.bf16 %v1938_v12  ;;  %v991_v14 = vunpack.c.h.bf16 %v1938_v12 }
 0x693   : > { %v2197_v15 = vadd.f32 %v990_v13, %v2163_v39  ;;  %v2200_v16 = vadd.f32 %v991_v14, %v2166_v40  ;;  %v1922_v39 = vld [vmem:[#allocation2 + $0x278] sm:$0xff]   ;;  %v1515_v40 = vld [vmem:[%s2238_s2 + $0x8] ss:$0 sm:$0xff] }
 0x695   : > { %v994_v17 = vpack.c.bf16 %v2200_v16, %v2197_v15 }
 0x697   : > { %1780 = vmatmul.mubr.bf16.vlgmr.msra.gmra.mrb[12].mxu1 %v994_v17 }
 0x698   : > { %1819 = vmatprep.mubr.msk.bf16.mxu1 %vm1991_vm0, %v1990_v0  ;;  %1804 = vmatpush3.bf16.msra.mxu1 %v1915_v23 }
 0x699   : > { %1805 = vmatprep.subr.bf16.mxu1 %v1990_v0 }
 0x69c   : > { %1806 = vmatpush3.bf16.msra.mxu1 %v1916_v24 }
 0x69d   : > { %1807 = vmatprep.subr.bf16.mxu1 %v1990_v0 }
 0x6a0   : > { %1808 = vmatpush3.bf16.msra.mxu1 %v1917_v34 }
 0x6a1   : > { %1809 = vmatprep.subr.bf16.mxu1 %v1990_v0 }
 0x6a4   : > { %1810 = vmatpush3.bf16.msra.mxu1 %v1918_v35 }
 0x6a5   : > { %1811 = vmatprep.subr.bf16.mxu1 %v1990_v0 }
 0x6a8   : > { %1812 = vmatpush3.bf16.msra.mxu1 %v1919_v36 }
 0x6a9   : > { %1813 = vmatprep.subr.bf16.mxu1 %v1990_v0 }
 0x6ac   : > { %1814 = vmatpush3.bf16.msra.mxu1 %v1920_v37 }
 0x6ad   : > { %1815 = vmatprep.subr.bf16.mxu1 %v1990_v0 }
 0x6b0   : > { %1816 = vmatpush3.bf16.msra.mxu1 %v1921_v38 }
 0x6b1   : > { %1817 = vmatprep.subr.bf16.mxu1 %v1990_v0 }
 0x6b4   : > { %1818 = vmatpush3.bf16.msra.mxu1 %v1922_v39 }
 0x76a   : > { %v1102_v26 = vpop.f32.mrb[12].mxu1 }
 0x76b   : > { %v1781_v27 = vpop.f32.mrb[13].mxu1  ;;  %v1103_v29 = vadd.f32 %v1505_v25, %v1102_v26 }
 0x76c   : > { %v1105_v28 = vpop.f32.mrb[14].mxu1 }
 0x76d   : > { %v1106_v30 = vadd.f32 %v1505_v25, %v1105_v28  ;;  %v1782_v31 = vpop.f32.mrb[15].mxu1 }
 0x76f   : > { %v1109_v32 = vpack.c.bf16 %v1106_v30, %v1103_v29 }
 0x771   : > { %1939 = vtanh.bf16 %v1109_v32 }
 0x77c   : > { %v1940_v33 = vpop.eup %1939 }
 0x77d   : > { %1800 = vmatmul.mubr.bf16.vlgmr.msra.gmra.mrb[16].mxu0 %v1940_v33 }
 0x850   : > { %v1218_v41 = vpop.f32.mrb[16].mxu0 }
 0x851   : > { %v1801_v42 = vpop.f32.mrb[17].mxu0  ;;  %v1219_v44 = vadd.f32 %v1515_v40, %v1218_v41 }
 0x852   : > { %v1221_v43 = vpop.f32.mrb[18].mxu0 }
 0x853   : > { %v1222_v45 = vadd.f32 %v1515_v40, %v1221_v43  ;;  %v1802_v46 = vpop.f32.mrb[19].mxu0 }
 0x855   : > { %v1225_v47 = vpack.c.bf16 %v1222_v45, %v1219_v44 }
 0x857   : > { %1941 = vtanh.bf16 %v1225_v47 }
 0x862   : > { %v1942_v48 = vpop.eup %1941 }
 0x863   : > { %v1227_v49 = vunpack.c.l.bf16 %v1942_v48  ;;  %v1228_v50 = vunpack.c.h.bf16 %v1942_v48 }
 0x865   : > { %v1229_v51 = vadd.f32 %v1227_v49, %v2197_v15  ;;  %v1230_v0 = vadd.f32 %v1228_v50, %v2200_v16 }
 0x867   : > { %v1231_v52 = vpack.c.bf16 %v1230_v0, %v1229_v51 }
 0x869   : > { %1820 = vmatmul.mubr.bf16.vlgmr.msra.gmra.mrb[16].mxu1 %v1231_v52 }
 0x93c   : > { %v1339_v54 = vpop.f32.mrb[16].mxu1 }
 0x93d   : > { %v1340_v55 = vadd.f32 %v1525_v53, %v1339_v54  ;;  %v1821_v56 = vpop.f32.mrb[17].mxu1 }
 0x93e   : > { %v1342_v57 = vpop.f32.mrb[18].mxu1 }
 0x93f   : > { %v1343_v58 = vadd.f32 %v1525_v53, %v1342_v57  ;;  %v1822_v59 = vpop.f32.mrb[19].mxu1  ;;  %1943 = vtanh.f32 %v1340_v55 }
 0x941   : > { %1945 = vtanh.f32 %v1343_v58 }
 0x949   : > { %v1944_v60 = vpop.eup %1943 }
 0x94b   : > { %v1946_v61 = vpop.eup %1945 }
 0x94c   : > { %v1543_v62 = vpack.c.bf16 %v1946_v61, %v1944_v60 }
 0x94e   : > { %1544 = vst [vmem:[%s187_s7] sm:$0xff] %v1543_v62  }
 0x94f PF: > { %s14_s12 = sadd.s32 1, %s1985_s12  }
 0x950   : > { %p11_p3 = scmp.ge.s32.totalorder %s14_s12, 4  }
 0x952   :  { %13 = sbr.rel (!%p11_p3) target bundleno = 1 (0x1), region = 85 }
 0x959   :  { %1380 = vsyncpa [#allocation3], 1 }
 0x95a   :  { %1382 = vsyncpa [#allocation3 + $0x1], 1 }

</bundles_post_ra>
